<compile_context>
chip_gen: v5e
topology: v5e:2x2
jax: 0.10.0
libtpu: 0.0.40
codegen_flags: <defaults>
</compile_context>

<pallas_src>
import functools

import jax
import jax.numpy as jnp
from jax.experimental import pallas as pl
from jax.experimental.pallas import tpu as pltpu


# ----------------------------------------------------------------------------
# Small static helpers (Python ints only).
# ----------------------------------------------------------------------------
def _round_up(x, m):
    return (x + m - 1) // m * m


def _cdiv(a, b):
    return (a + b - 1) // b


def _tpu_info():
    try:
        return pltpu.get_tpu_info()
    except Exception:
        return None


def _device_kind():
    try:
        return jax.devices()[0].device_kind.lower()
    except Exception:
        return ""


def _is_v7x():
    kind = _device_kind().replace(" ", "")
    return ("v7" in kind) or ("tpu7" in kind)


def _vmem_capacity_bytes():
    info = _tpu_info()
    if info is not None:
        for attr in ("vmem_capacity_bytes", "vmem_bytes", "vmem_size_bytes"):
            v = getattr(info, attr, None)
            if isinstance(v, int) and v > 0:
                return v
    # v7x: 64 MiB per TensorCore; v5e/v6e: 128 MiB.
    return (64 if _is_v7x() else 128) * 1024 * 1024


def _num_tensorcores():
    info = _tpu_info()
    if info is not None:
        for attr in ("num_tensorcores", "tensorcore_count", "num_cores", "core_count"):
            v = getattr(info, attr, None)
            if isinstance(v, int) and v > 0:
                return max(1, min(2, v))
    return 2 if _is_v7x() else 1


def _estimate_vmem_bytes(tn, dp, kp, eht_itemsize):
    """Rough VMEM estimate for one grid step (single-buffered codebooks)."""
    codebook = dp * kp * eht_itemsize + kp * dp * 4          # eht + e, 1 buffer each
    x_io = 2 * tn * dp * 4                                    # streamed x (double buffer)
    q_io = 2 * tn * dp * 4                                    # quantized out (double buffer)
    narrow = 2 * (tn * 128 * 4) + 2 * (8 * 128 * 4)           # idx + loss partial (lane-padded)
    inter = tn * dp * 4 + 3 * tn * kp * 4                     # xh + dist/col/one_hot temporaries
    return codebook + x_io + q_io + narrow + inter


def _choose_tile(n_rows, tn_req, dp, kp, eht_itemsize, vmem_budget, num_tc):
    """Row tile: multiple of 8, fits VMEM with margin, >= num_tc steps on multi-TC chips."""
    tn = max(8, min(_round_up(tn_req, 8), _round_up(n_rows, 8)))
    # VMEM discipline: shrink until the estimate fits with ~40% headroom.
    while tn > 8 and _estimate_vmem_bytes(tn, dp, kp, eht_itemsize) > 0.6 * vmem_budget:
        tn = max(8, _round_up(tn // 2, 8))
    # Only force a split when there is more than one TensorCore and enough work.
    if num_tc > 1 and n_rows > 8 * num_tc:
        tn = min(tn, max(8, _round_up(_cdiv(n_rows, num_tc), 8)))
    return tn


# ----------------------------------------------------------------------------
# Kernel.
# ----------------------------------------------------------------------------
def _aq_kernel(*refs, k_real, n_valid, tn, has_labels, dist_dtype):
    if has_labels:
        x_ref, eht_ref, e_ref, lbl_ref, quant_ref, idx_ref, loss_ref = refs
    else:
        x_ref, eht_ref, e_ref, quant_ref, idx_ref, loss_ref = refs

    x = x_ref[...]                                            # (tn, Dp) f32

    # F.normalize(x, dim=1): x / max(||x||, 1e-12) == x * rsqrt(max(||x||^2, 1e-24))
    ssq = jnp.sum(x * x, axis=1, keepdims=True)               # (tn, 1)
    xh = x * jax.lax.rsqrt(jnp.maximum(ssq, 1e-24))           # (tn, Dp) f32

    # Cosine similarities vs. the pre-normalized, pre-transposed codebook (MXU).
    # bf16 by default for full MXU rate; f32 path available for bit-comparability.
    dist = jnp.dot(xh.astype(dist_dtype), eht_ref[...],
                   preferred_element_type=jnp.float32)        # (tn, Kp) f32

    kp = dist.shape[1]
    col = jax.lax.broadcasted_iota(jnp.int32, dist.shape, 1)
    if k_real < kp:
        # padded (zero) codebook rows must never be selected
        dist = jnp.where(col < k_real, dist, -jnp.inf)

    # argmax with first-occurrence tie-break (torch.argmax semantics)
    maxv = jnp.max(dist, axis=1, keepdims=True)               # (tn, 1)
    idx = jnp.min(jnp.where(dist == maxv, col, kp), axis=1, keepdims=True)

    # quantize: one_hot @ E stays in f32 so emitted rows track the raw codebook
    one_hot = (col == idx).astype(jnp.float32)                # (tn, Kp)
    quant_ref[...] = jnp.dot(one_hot, e_ref[...], preferred_element_type=jnp.float32)
    idx_ref[...] = idx

    if has_labels:
        # gather the similarity at the provided per-row label (labels branch)
        sim = jnp.sum(jnp.where(col == lbl_ref[...], dist, 0.0),
                      axis=1, keepdims=True)                  # (tn, 1)
    else:
        sim = maxv

    # Per-tile partial commitment-loss sum over the valid (non-padded) rows.
    row = jax.lax.broadcasted_iota(jnp.int32, (tn, 1), 0) + pl.program_id(0) * tn
    contrib = jnp.where(row < n_valid, 1.0 - sim, 0.0)
    s = jnp.sum(contrib)
    loss_ref[...] = jnp.full((8, 128), s, dtype=jnp.float32)


def _run_aq_kernel(x_pad, eht_pad, e_pad, lbl_col, *, k_real, n_valid, tn,
                   has_labels, dist_dtype, vmem_limit_bytes):
    n_pad, dp = x_pad.shape
    kp = e_pad.shape[0]
    assert n_pad % tn == 0
    n_grid = n_pad // tn
    eht_itemsize = jnp.dtype(dist_dtype).itemsize

    kernel = functools.partial(_aq_kernel, k_real=k_real, n_valid=n_valid, tn=tn,
                               has_labels=has_labels, dist_dtype=dist_dtype)

    out_shape = (
        jax.ShapeDtypeStruct((n_pad, dp), jnp.float32),        # quantized rows
        jax.ShapeDtypeStruct((n_pad, 1), jnp.int32),            # encoding indices
        jax.ShapeDtypeStruct((n_grid * 8, 128), jnp.float32),   # per-tile loss partial sums
    )
    out_specs = [
        pl.BlockSpec((tn, dp), lambda i: (i, 0)),
        pl.BlockSpec((tn, 1), lambda i: (i, 0)),
        pl.BlockSpec((8, 128), lambda i: (i, 0)),
    ]

    def build_in_specs(single_buffer_codebook):
        cb_kwargs = ({"pipeline_mode": pl.Buffered(1)}
                     if single_buffer_codebook else {})
        specs = [
            pl.BlockSpec((tn, dp), lambda i: (i, 0)),              # x rows (streamed)
            pl.BlockSpec((dp, kp), lambda i: (0, 0), **cb_kwargs),  # normalized codebook^T
            pl.BlockSpec((kp, dp), lambda i: (0, 0), **cb_kwargs),  # raw codebook
        ]
        if has_labels:
            specs.append(pl.BlockSpec((tn, 1), lambda i: (i, 0)))   # per-row labels
        return specs

    args = (x_pad, eht_pad, e_pad) + ((lbl_col,) if has_labels else ())

    cost = pl.CostEstimate(
        flops=4 * n_pad * kp * dp,                       # dist + quantize matmuls
        transcendentals=n_pad,                           # rsqrt per row
        bytes_accessed=(n_pad * dp * 4                   # x in
                        + dp * kp * eht_itemsize         # normalized codebook^T
                        + kp * dp * 4                    # raw codebook
                        + (n_pad * 4 if has_labels else 0)
                        + n_pad * dp * 4                 # quantized out
                        + n_pad * 4                      # indices out
                        + n_grid * 8 * 128 * 4),         # loss partials out
    )

    last_err = None
    for single_buffer in (True, False):
        try:
            return pl.pallas_call(
                kernel,
                out_shape=out_shape,
                grid_spec=pltpu.PrefetchScalarGridSpec(
                    num_scalar_prefetch=0,
                    grid=(n_grid,),
                    in_specs=build_in_specs(single_buffer),
                    out_specs=out_specs,
                ),
                compiler_params=pltpu.CompilerParams(
                    dimension_semantics=("parallel",),
                    vmem_limit_bytes=vmem_limit_bytes,
                ),
                cost_estimate=cost,
            )(*args)
        except Exception as e:  # fall back to default double-buffered codebooks
            last_err = e
    raise last_err


# ----------------------------------------------------------------------------
# Wrapper: AttributeQuantizer.forward (dist_type='cosine').
# ----------------------------------------------------------------------------
def attribute_quantizer_forward(inputs, embedding, labels=None, tn=512,
                                dist_dtype=jnp.bfloat16):
    """JAX/Pallas equivalent of AttributeQuantizer.forward (dist_type='cosine').

    inputs:     (..., D) float
    embedding:  (K, D) float32 (orthogonal-initialized, frozen codebook)
    labels:     optional int array with prod(inputs.shape[:-1]) entries
    dist_dtype: dtype of the distance matmul (bf16 default; f32 for bit-exactness)
    Returns (loss, quantized, perplexity, encodings, encoding_indices).
    """
    input_shape = inputs.shape
    num_k, d = embedding.shape
    flat_input = jnp.asarray(inputs, jnp.float32).reshape(-1, d)
    n = flat_input.shape[0]

    # Static padding / tiling decisions (Python ints).
    dp = _round_up(d, 128)
    kp = _round_up(num_k, 128)
    eht_itemsize = jnp.dtype(dist_dtype).itemsize

    vmem_capacity = _vmem_capacity_bytes()
    vmem_limit = min(vmem_capacity, max(32 * 1024 * 1024, int(0.75 * vmem_capacity)))
    num_tc = _num_tensorcores()

    tn = _choose_tile(n, tn, dp, kp, eht_itemsize, vmem_limit, num_tc)
    n_pad = _round_up(n, tn)
    if num_tc > 1 and (n_pad // tn) >= num_tc:
        # keep the grid length an even multiple of the TensorCore count
        n_pad = _round_up(n_pad, num_tc * tn)

    x_pad = jnp.pad(flat_input, ((0, n_pad - n), (0, dp - d)))
    e_pad = jnp.pad(jnp.asarray(embedding, jnp.float32), ((0, kp - num_k), (0, dp - d)))
    # codebook normalization hoisted out of the kernel, F.normalize semantics
    e_norm = jnp.maximum(jnp.sqrt(jnp.sum(e_pad * e_pad, axis=1, keepdims=True)), 1e-12)
    eht_pad = (e_pad / e_norm).T.astype(dist_dtype)            # (Dp, Kp), no in-kernel transpose

    has_labels = labels is not None
    if has_labels:
        lbl_flat = jnp.clip(jnp.asarray(labels, jnp.int32).reshape(-1), 0, num_k - 1)
        lbl_col = jnp.pad(lbl_flat, (0, n_pad - n)).reshape(n_pad, 1)
    else:
        lbl_col = None

    quant_pad, idx_pad, loss_buf = _run_aq_kernel(
        x_pad, eht_pad, e_pad, lbl_col, k_real=num_k, n_valid=n, tn=tn,
        has_labels=has_labels, dist_dtype=dist_dtype, vmem_limit_bytes=vmem_limit)

    quant_flat = quant_pad[:n, :d]
    enc_idx = idx_pad[:n]                                       # (N, 1) int32
    # each (8, 128) block holds its tile's partial sum broadcast over 1024 slots
    loss = jnp.sum(loss_buf) / (8.0 * 128.0) / n

    quantized = quant_flat.reshape(input_shape)
    # straight-through estimator: forward value == quantized
    quantized = inputs + jax.lax.stop_gradient(quantized - inputs)

    # One-hot encodings are part of the module's return signature; rebuild them
    # from the indices instead of streaming an (N, K) matrix out of the kernel.
    encodings = jax.nn.one_hot(enc_idx[:, 0], num_k, dtype=jnp.float32)

    if has_labels:
        perplexity = jnp.array(1, dtype=jnp.int32)
    else:
        # perplexity from a bincount over the indices (no (N,K) dependence)
        counts = jnp.bincount(enc_idx[:, 0], length=num_k).astype(jnp.float32)
        avg_probs = counts / n
        perplexity = jnp.exp(-jnp.sum(avg_probs * jnp.log(avg_probs + 1e-10)))

    return loss, quantized, perplexity, encodings, enc_idx


def make_orthogonal_embedding(key, num_embeddings, embedding_dim):
    # Deterministic stand-in for nn.init.orthogonal_: rows are orthonormal.
    a = jax.random.normal(key, (embedding_dim, num_embeddings), dtype=jnp.float32)
    q, _ = jnp.linalg.qr(a)            # (D, K) with orthonormal columns (K <= D)
    return q.T.astype(jnp.float32)     # (K, D) rows orthonormal


def _reference_forward(inputs, embedding, labels=None):
    """Pure-JAX mirror of the PyTorch forward (cosine branch) for validation."""
    k, d = embedding.shape
    flat = inputs.reshape(-1, d)
    xn = flat / jnp.maximum(jnp.linalg.norm(flat, axis=1, keepdims=True), 1e-12)
    en = embedding / jnp.maximum(jnp.linalg.norm(embedding, axis=1, keepdims=True), 1e-12)
    dist = xn @ en.T
    idx = jnp.argmax(dist, axis=1)
    enc = jax.nn.one_hot(idx, k, dtype=jnp.float32)
    quant = (enc @ embedding).reshape(inputs.shape)
    quant = inputs + jax.lax.stop_gradient(quant - inputs)
    if labels is not None:
        gathered = jnp.take_along_axis(dist, labels.reshape(-1, 1), axis=1)[:, 0]
        loss = jnp.mean(1.0 - gathered)
        perp = jnp.array(1, jnp.int32)
    else:
        gathered = jnp.take_along_axis(dist, idx[:, None], axis=1)[:, 0]
        loss = jnp.mean(1.0 - gathered)
        avg = jnp.mean(enc, axis=0)
        perp = jnp.exp(-jnp.sum(avg * jnp.log(avg + 1e-10)))
    return loss, quant, perp, enc, idx[:, None].astype(jnp.int32)


if __name__ == "__main__":
    num_embeddings = 16
    embedding_dim = 32
    B, T = 2, 8                        # inputs (B, T, D) -> N = 16 flat rows

    key = jax.random.PRNGKey(0)
    k_emb, k_idx, k_scale, k_noise, k_lab = jax.random.split(key, 5)

    embedding = make_orthogonal_embedding(k_emb, num_embeddings, embedding_dim)
    # Inputs are noisy scaled copies of codebook rows: the argmax margin is large,
    # so code selection is unambiguous under both f32 and bf16 distance matmuls.
    true_idx = jax.random.randint(k_idx, (B * T,), 0, num_embeddings, dtype=jnp.int32)
    scale = jax.random.uniform(k_scale, (B * T, 1), minval=0.5, maxval=2.0)
    noise = 0.05 * jax.random.normal(k_noise, (B * T, embedding_dim), dtype=jnp.float32)
    inputs = (embedding[true_idx] * scale + noise).reshape(B, T, embedding_dim)
    labels = jax.random.randint(k_lab, (B * T,), 0, num_embeddings, dtype=jnp.int32)

    # ------------------------- f32 distance path -------------------------
    out = attribute_quantizer_forward(inputs, embedding, labels=None,
                                      dist_dtype=jnp.float32)
    loss, quantized, perplexity, encodings, enc_idx = jax.block_until_ready(out)

    out_l = attribute_quantizer_forward(inputs, embedding, labels=labels,
                                        dist_dtype=jnp.float32)
    loss_l, quantized_l, perplexity_l, encodings_l, enc_idx_l = jax.block_until_ready(out_l)

    # shape sanity
    assert quantized.shape == inputs.shape
    assert encodings.shape == (B * T, num_embeddings)
    assert enc_idx.shape == (B * T, 1)

    # correctness vs pure-JAX reference of the PyTorch forward
    r_loss, r_quant, r_perp, r_enc, r_idx = _reference_forward(inputs, embedding, None)
    assert jnp.array_equal(enc_idx, r_idx)
    assert jnp.array_equal(encodings, r_enc)
    assert jnp.allclose(loss, r_loss, atol=5e-3)
    assert jnp.allclose(quantized, r_quant, atol=5e-3)
    assert jnp.allclose(perplexity, r_perp, rtol=1e-4, atol=1e-4)

    rl_loss, rl_quant, rl_perp, rl_enc, rl_idx = _reference_forward(inputs, embedding, labels)
    assert jnp.array_equal(enc_idx_l, rl_idx)
    assert jnp.allclose(loss_l, rl_loss, atol=5e-3)
    assert jnp.allclose(quantized_l, rl_quant, atol=5e-3)
    assert int(perplexity_l) == 1

    # quantized rows track the codebook rows selected by enc_idx
    sel = embedding[enc_idx[:, 0]]
    assert jnp.allclose(quantized.reshape(-1, embedding_dim), sel, atol=5e-3)

    # ----------------------- bf16 distance path (default) -----------------------
    out_bf = attribute_quantizer_forward(inputs, embedding, labels=None)
    loss_bf, quant_bf, perp_bf, enc_bf, idx_bf = jax.block_until_ready(out_bf)
    assert quant_bf.shape == inputs.shape
    assert bool(jnp.isfinite(loss_bf))
    assert jnp.array_equal(idx_bf, r_idx)              # large-margin codes: bf16-safe
    assert jnp.allclose(loss_bf, r_loss, atol=2e-2)
    sel_bf = embedding[idx_bf[:, 0]]
    assert jnp.allclose(quant_bf.reshape(-1, embedding_dim), sel_bf, atol=5e-3)

    print("KERNEL_OK")
</pallas_src>

<mosaic_0001>
module attributes {stable_mosaic.version = 11 : i64} {
  func.func @_aq_kernel(%arg0: i32, %arg1: memref<16x128xf32, #tpu.memory_space<vmem>>, %arg2: memref<128x128xf32, #tpu.memory_space<vmem>>, %arg3: memref<128x128xf32, #tpu.memory_space<vmem>>, %arg4: memref<16x128xf32, #tpu.memory_space<vmem>>, %arg5: memref<16x1xi32, #tpu.memory_space<vmem>>, %arg6: memref<8x128xf32, #tpu.memory_space<vmem>>) attributes {dimension_semantics = [#tpu.dimension_semantics<parallel>], iteration_bounds = array<i64: 1>, scalar_prefetch = 0 : i64, scratch_operands = 0 : i64, tpu.core_type = #tpu.core_type<tc>, window_params = [{transform_indices = @transform_0, window_bounds = array<i64: 16, 128>}, {pipeline_mode = #tpu.pipeline_mode<synchronous>, transform_indices = @transform_1, window_bounds = array<i64: 128, 128>}, {pipeline_mode = #tpu.pipeline_mode<synchronous>, transform_indices = @transform_2, window_bounds = array<i64: 128, 128>}, {transform_indices = @transform_3, window_bounds = array<i64: 16, 128>}, {transform_indices = @transform_4, window_bounds = array<i64: 16, 1>}, {transform_indices = @transform_5, window_bounds = array<i64: 8, 128>}]} {
    %c0 = arith.constant 0 : index
    %c0_0 = arith.constant 0 : index
    %0 = vector.load %arg1[%c0, %c0_0] : memref<16x128xf32, #tpu.memory_space<vmem>>, vector<16x128xf32>
    %1 = arith.mulf %0, %0 : vector<16x128xf32>
    %cst = arith.constant dense<0.000000e+00> : vector<16xf32>
    %2 = vector.multi_reduction <add>, %1, %cst [1] : vector<16x128xf32> to vector<16xf32>
    %3 = vector.shape_cast %2 : vector<16xf32> to vector<16x1xf32>
    %cst_1 = arith.constant 1.000000e-24 : f32
    %4 = vector.broadcast %cst_1 : f32 to vector<16x1xf32>
    %5 = arith.maximumf %3, %4 : vector<16x1xf32>
    %6 = math.rsqrt %5 : vector<16x1xf32>
    %7 = vector.broadcast %6 : vector<16x1xf32> to vector<16x128xf32>
    %8 = arith.mulf %0, %7 : vector<16x128xf32>
    %c0_2 = arith.constant 0 : index
    %c0_3 = arith.constant 0 : index
    %9 = vector.load %arg2[%c0_2, %c0_3] : memref<128x128xf32, #tpu.memory_space<vmem>>, vector<128x128xf32>
    %cst_4 = arith.constant dense<0.000000e+00> : vector<16x128xf32>
    %10 = tpu.matmul %8, %9, %cst_4 {dimension_numbers = #tpu.dot_dimension_numbers<[1], [0], [0], [1], [0, 0, 1, 1], [], []>} : vector<16x128xf32>, vector<128x128xf32>, vector<16x128xf32> -> vector<16x128xf32>
    %11 = tpu.iota {dimensions = array<i32: 1>} : vector<16x128xi32>
    %c16_i32 = arith.constant 16 : i32
    %12 = vector.broadcast %c16_i32 : i32 to vector<16x128xi32>
    %13 = arith.cmpi slt, %11, %12 : vector<16x128xi32>
    %cst_5 = arith.constant 0xFF800000 : f32
    %14 = vector.broadcast %cst_5 : f32 to vector<16x128xf32>
    %15 = arith.select %13, %10, %14 : vector<16x128xi1>, vector<16x128xf32>
    %cst_6 = arith.constant dense<0xFF800000> : vector<16xf32>
    %16 = vector.multi_reduction <maximumf>, %15, %cst_6 [1] : vector<16x128xf32> to vector<16xf32>
    %17 = vector.shape_cast %16 : vector<16xf32> to vector<16x1xf32>
    %18 = vector.broadcast %17 : vector<16x1xf32> to vector<16x128xf32>
    %19 = arith.cmpf oeq, %15, %18 : vector<16x128xf32>
    %c128_i32 = arith.constant 128 : i32
    %20 = vector.broadcast %c128_i32 : i32 to vector<16x128xi32>
    %21 = arith.select %19, %11, %20 : vector<16x128xi1>, vector<16x128xi32>
    %cst_7 = arith.constant dense<2147483647> : vector<16xi32>
    %22 = vector.multi_reduction <minsi>, %21, %cst_7 [1] : vector<16x128xi32> to vector<16xi32>
    %23 = vector.shape_cast %22 : vector<16xi32> to vector<16x1xi32>
    %24 = vector.broadcast %23 : vector<16x1xi32> to vector<16x128xi32>
    %25 = arith.cmpi eq, %11, %24 : vector<16x128xi32>
    %26 = arith.extui %25 : vector<16x128xi1> to vector<16x128xi32>
    %27 = arith.sitofp %26 : vector<16x128xi32> to vector<16x128xf32>
    %c0_8 = arith.constant 0 : index
    %c0_9 = arith.constant 0 : index
    %28 = vector.load %arg3[%c0_8, %c0_9] : memref<128x128xf32, #tpu.memory_space<vmem>>, vector<128x128xf32>
    %cst_10 = arith.constant dense<0.000000e+00> : vector<16x128xf32>
    %29 = tpu.matmul %27, %28, %cst_10 {dimension_numbers = #tpu.dot_dimension_numbers<[1], [0], [0], [1], [0, 0, 1, 1], [], []>} : vector<16x128xf32>, vector<128x128xf32>, vector<16x128xf32> -> vector<16x128xf32>
    %c0_11 = arith.constant 0 : index
    %c0_12 = arith.constant 0 : index
    %30 = vector.load %arg4[%c0_11, %c0_12] : memref<16x128xf32, #tpu.memory_space<vmem>>, vector<16x128xf32>
    tpu.vector_store %arg4[%c0_11, %c0_12], %29 {strides = array<i32>} : memref<16x128xf32, #tpu.memory_space<vmem>>, vector<16x128xf32>,
    %c0_13 = arith.constant 0 : index
    %c0_14 = arith.constant 0 : index
    %31 = vector.load %arg5[%c0_13, %c0_14] : memref<16x1xi32, #tpu.memory_space<vmem>>, vector<16x1xi32>
    tpu.vector_store %arg5[%c0_13, %c0_14], %23 {strides = array<i32>} : memref<16x1xi32, #tpu.memory_space<vmem>>, vector<16x1xi32>,
    %32 = tpu.iota {dimensions = array<i32: 0>} : vector<16x1xi32>
    %c16_i32_15 = arith.constant 16 : i32
    %33 = arith.muli %arg0, %c16_i32_15 : i32
    %34 = vector.broadcast %33 : i32 to vector<16x1xi32>
    %35 = arith.addi %32, %34 : vector<16x1xi32>
    %c16_i32_16 = arith.constant 16 : i32
    %36 = vector.broadcast %c16_i32_16 : i32 to vector<16x1xi32>
    %37 = arith.cmpi slt, %35, %36 : vector<16x1xi32>
    %cst_17 = arith.constant 1.000000e+00 : f32
    %38 = vector.broadcast %cst_17 : f32 to vector<16x1xf32>
    %39 = arith.subf %38, %17 : vector<16x1xf32>
    %cst_18 = arith.constant 0.000000e+00 : f32
    %40 = vector.broadcast %cst_18 : f32 to vector<16x1xf32>
    %41 = arith.select %37, %39, %40 : vector<16x1xi1>, vector<16x1xf32>
    %42 = vector.shape_cast %41 : vector<16x1xf32> to vector<1x16x1xf32>
    %cst_19 = arith.constant dense<0.000000e+00> : vector<1xf32>
    %43 = vector.multi_reduction <add>, %42, %cst_19 [1, 2] : vector<1x16x1xf32> to vector<1xf32>
    %44 = vector.shape_cast %43 : vector<1xf32> to vector<1x1x1xf32>
    %45 = vector.extract %44[0, 0, 0] : f32 from vector<1x1x1xf32>
    %46 = vector.broadcast %45 : f32 to vector<8x128xf32>
    %c0_20 = arith.constant 0 : index
    %c0_21 = arith.constant 0 : index
    %47 = vector.load %arg6[%c0_20, %c0_21] : memref<8x128xf32, #tpu.memory_space<vmem>>, vector<8x128xf32>
    tpu.vector_store %arg6[%c0_20, %c0_21], %46 {strides = array<i32>} : memref<8x128xf32, #tpu.memory_space<vmem>>, vector<8x128xf32>,
    return
  }
  func.func @transform_0(%arg0: i32) -> (i32, i32) {
    %c0_i32 = arith.constant 0 : i32
    %c0_i32_0 = arith.constant 0 : i32
    return %arg0, %c0_i32 : i32, i32
  }
  func.func @transform_1(%arg0: i32) -> (i32, i32) {
    %c0_i32 = arith.constant 0 : i32
    %c0_i32_0 = arith.constant 0 : i32
    %c0_i32_1 = arith.constant 0 : i32
    return %c0_i32, %c0_i32_0 : i32, i32
  }
  func.func @transform_2(%arg0: i32) -> (i32, i32) {
    %c0_i32 = arith.constant 0 : i32
    %c0_i32_0 = arith.constant 0 : i32
    %c0_i32_1 = arith.constant 0 : i32
    return %c0_i32, %c0_i32_0 : i32, i32
  }
  func.func @transform_3(%arg0: i32) -> (i32, i32) {
    %c0_i32 = arith.constant 0 : i32
    %c0_i32_0 = arith.constant 0 : i32
    return %arg0, %c0_i32 : i32, i32
  }
  func.func @transform_4(%arg0: i32) -> (i32, i32) {
    %c0_i32 = arith.constant 0 : i32
    %c0_i32_0 = arith.constant 0 : i32
    return %arg0, %c0_i32 : i32, i32
  }
  func.func @transform_5(%arg0: i32) -> (i32, i32) {
    %c0_i32 = arith.constant 0 : i32
    %c0_i32_0 = arith.constant 0 : i32
    return %arg0, %c0_i32 : i32, i32
  }
}

module attributes {stable_mosaic.version = 11 : i64} {
  func.func @_aq_kernel(%arg0: i32, %arg1: memref<16x128xf32, #tpu.memory_space<vmem>>, %arg2: memref<128x128xf32, #tpu.memory_space<vmem>>, %arg3: memref<128x128xf32, #tpu.memory_space<vmem>>, %arg4: memref<16x128xf32, #tpu.memory_space<vmem>>, %arg5: memref<16x1xi32, #tpu.memory_space<vmem>>, %arg6: memref<8x128xf32, #tpu.memory_space<vmem>>) attributes {dimension_semantics = [#tpu.dimension_semantics<parallel>], iteration_bounds = array<i64: 1>, scalar_prefetch = 0 : i64, scratch_operands = 0 : i64, tpu.core_type = #tpu.core_type<tc>, window_params = [{transform_indices = @transform_0, window_bounds = array<i64: 16, 128>}, {pipeline_mode = #tpu.pipeline_mode<synchronous>, transform_indices = @transform_1, window_bounds = array<i64: 128, 128>}, {pipeline_mode = #tpu.pipeline_mode<synchronous>, transform_indices = @transform_2, window_bounds = array<i64: 128, 128>}, {transform_indices = @transform_3, window_bounds = array<i64: 16, 128>}, {transform_indices = @transform_4, window_bounds = array<i64: 16, 1>}, {transform_indices = @transform_5, window_bounds = array<i64: 8, 128>}]} {
    %c0 = arith.constant 0 : index
    %c0_0 = arith.constant 0 : index
    %0 = vector.load %arg1[%c0, %c0_0] : memref<16x128xf32, #tpu.memory_space<vmem>>, vector<16x128xf32>
    %1 = arith.mulf %0, %0 : vector<16x128xf32>
    %cst = arith.constant dense<0.000000e+00> : vector<16xf32>
    %2 = vector.multi_reduction <add>, %1, %cst [1] : vector<16x128xf32> to vector<16xf32>
    %3 = vector.shape_cast %2 : vector<16xf32> to vector<16x1xf32>
    %cst_1 = arith.constant 1.000000e-24 : f32
    %4 = vector.broadcast %cst_1 : f32 to vector<16x1xf32>
    %5 = arith.maximumf %3, %4 : vector<16x1xf32>
    %6 = math.rsqrt %5 : vector<16x1xf32>
    %7 = vector.broadcast %6 : vector<16x1xf32> to vector<16x128xf32>
    %8 = arith.mulf %0, %7 : vector<16x128xf32>
    %c0_2 = arith.constant 0 : index
    %c0_3 = arith.constant 0 : index
    %9 = vector.load %arg2[%c0_2, %c0_3] : memref<128x128xf32, #tpu.memory_space<vmem>>, vector<128x128xf32>
    %cst_4 = arith.constant dense<0.000000e+00> : vector<16x128xf32>
    %10 = tpu.matmul %8, %9, %cst_4 {dimension_numbers = #tpu.dot_dimension_numbers<[1], [0], [0], [1], [0, 0, 1, 1], [], []>} : vector<16x128xf32>, vector<128x128xf32>, vector<16x128xf32> -> vector<16x128xf32>
    %11 = tpu.iota {dimensions = array<i32: 1>} : vector<16x128xi32>
    %c16_i32 = arith.constant 16 : i32
    %12 = vector.broadcast %c16_i32 : i32 to vector<16x128xi32>
    %13 = arith.cmpi slt, %11, %12 : vector<16x128xi32>
    %cst_5 = arith.constant 0xFF800000 : f32
    %14 = vector.broadcast %cst_5 : f32 to vector<16x128xf32>
    %15 = arith.select %13, %10, %14 : vector<16x128xi1>, vector<16x128xf32>
    %cst_6 = arith.constant dense<0xFF800000> : vector<16xf32>
    %16 = vector.multi_reduction <maximumf>, %15, %cst_6 [1] : vector<16x128xf32> to vector<16xf32>
    %17 = vector.shape_cast %16 : vector<16xf32> to vector<16x1xf32>
    %18 = vector.broadcast %17 : vector<16x1xf32> to vector<16x128xf32>
    %19 = arith.cmpf oeq, %15, %18 : vector<16x128xf32>
    %c128_i32 = arith.constant 128 : i32
    %20 = vector.broadcast %c128_i32 : i32 to vector<16x128xi32>
    %21 = arith.select %19, %11, %20 : vector<16x128xi1>, vector<16x128xi32>
    %cst_7 = arith.constant dense<2147483647> : vector<16xi32>
    %22 = vector.multi_reduction <minsi>, %21, %cst_7 [1] : vector<16x128xi32> to vector<16xi32>
    %23 = vector.shape_cast %22 : vector<16xi32> to vector<16x1xi32>
    %24 = vector.broadcast %23 : vector<16x1xi32> to vector<16x128xi32>
    %25 = arith.cmpi eq, %11, %24 : vector<16x128xi32>
    %26 = arith.extui %25 : vector<16x128xi1> to vector<16x128xi32>
    %27 = arith.sitofp %26 : vector<16x128xi32> to vector<16x128xf32>
    %c0_8 = arith.constant 0 : index
    %c0_9 = arith.constant 0 : index
    %28 = vector.load %arg3[%c0_8, %c0_9] : memref<128x128xf32, #tpu.memory_space<vmem>>, vector<128x128xf32>
    %cst_10 = arith.constant dense<0.000000e+00> : vector<16x128xf32>
    %29 = tpu.matmul %27, %28, %cst_10 {dimension_numbers = #tpu.dot_dimension_numbers<[1], [0], [0], [1], [0, 0, 1, 1], [], []>} : vector<16x128xf32>, vector<128x128xf32>, vector<16x128xf32> -> vector<16x128xf32>
    %c0_11 = arith.constant 0 : index
    %c0_12 = arith.constant 0 : index
    %30 = vector.load %arg4[%c0_11, %c0_12] : memref<16x128xf32, #tpu.memory_space<vmem>>, vector<16x128xf32>
    tpu.vector_store %arg4[%c0_11, %c0_12], %29 {strides = array<i32>} : memref<16x128xf32, #tpu.memory_space<vmem>>, vector<16x128xf32>,
    %c0_13 = arith.constant 0 : index
    %c0_14 = arith.constant 0 : index
    %31 = vector.load %arg5[%c0_13, %c0_14] : memref<16x1xi32, #tpu.memory_space<vmem>>, vector<16x1xi32>
    tpu.vector_store %arg5[%c0_13, %c0_14], %23 {strides = array<i32>} : memref<16x1xi32, #tpu.memory_space<vmem>>, vector<16x1xi32>,
    %32 = tpu.iota {dimensions = array<i32: 0>} : vector<16x1xi32>
    %c16_i32_15 = arith.constant 16 : i32
    %33 = arith.muli %arg0, %c16_i32_15 : i32
    %34 = vector.broadcast %33 : i32 to vector<16x1xi32>
    %35 = arith.addi %32, %34 : vector<16x1xi32>
    %c16_i32_16 = arith.constant 16 : i32
    %36 = vector.broadcast %c16_i32_16 : i32 to vector<16x1xi32>
    %37 = arith.cmpi slt, %35, %36 : vector<16x1xi32>
    %cst_17 = arith.constant 1.000000e+00 : f32
    %38 = vector.broadcast %cst_17 : f32 to vector<16x1xf32>
    %39 = arith.subf %38, %17 : vector<16x1xf32>
    %cst_18 = arith.constant 0.000000e+00 : f32
    %40 = vector.broadcast %cst_18 : f32 to vector<16x1xf32>
    %41 = arith.select %37, %39, %40 : vector<16x1xi1>, vector<16x1xf32>
    %42 = vector.shape_cast %41 : vector<16x1xf32> to vector<1x16x1xf32>
    %cst_19 = arith.constant dense<0.000000e+00> : vector<1xf32>
    %43 = vector.multi_reduction <add>, %42, %cst_19 [1, 2] : vector<1x16x1xf32> to vector<1xf32>
    %44 = vector.shape_cast %43 : vector<1xf32> to vector<1x1x1xf32>
    %45 = vector.extract %44[0, 0, 0] : f32 from vector<1x1x1xf32>
    %46 = vector.broadcast %45 : f32 to vector<8x128xf32>
    %c0_20 = arith.constant 0 : index
    %c0_21 = arith.constant 0 : index
    %47 = vector.load %arg6[%c0_20, %c0_21] : memref<8x128xf32, #tpu.memory_space<vmem>>, vector<8x128xf32>
    tpu.vector_store %arg6[%c0_20, %c0_21], %46 {strides = array<i32>} : memref<8x128xf32, #tpu.memory_space<vmem>>, vector<8x128xf32>,
    return
  }
  func.func @transform_0(%arg0: i32) -> (i32, i32) {
    %c0_i32 = arith.constant 0 : i32
    %c0_i32_0 = arith.constant 0 : i32
    return %arg0, %c0_i32 : i32, i32
  }
  func.func @transform_1(%arg0: i32) -> (i32, i32) {
    %c0_i32 = arith.constant 0 : i32
    %c0_i32_0 = arith.constant 0 : i32
    %c0_i32_1 = arith.constant 0 : i32
    return %c0_i32, %c0_i32_0 : i32, i32
  }
  func.func @transform_2(%arg0: i32) -> (i32, i32) {
    %c0_i32 = arith.constant 0 : i32
    %c0_i32_0 = arith.constant 0 : i32
    %c0_i32_1 = arith.constant 0 : i32
    return %c0_i32, %c0_i32_0 : i32, i32
  }
  func.func @transform_3(%arg0: i32) -> (i32, i32) {
    %c0_i32 = arith.constant 0 : i32
    %c0_i32_0 = arith.constant 0 : i32
    return %arg0, %c0_i32 : i32, i32
  }
  func.func @transform_4(%arg0: i32) -> (i32, i32) {
    %c0_i32 = arith.constant 0 : i32
    %c0_i32_0 = arith.constant 0 : i32
    return %arg0, %c0_i32 : i32, i32
  }
  func.func @transform_5(%arg0: i32) -> (i32, i32) {
    %c0_i32 = arith.constant 0 : i32
    %c0_i32_0 = arith.constant 0 : i32
    return %arg0, %c0_i32 : i32, i32
  }
}

</mosaic_0001>

<bundles_post_ra>
// kernel: tpu_custom_call.1
= control target key start
LH: loop header
LB: loop body
LE: loop exit
PB: predicated region body
PF: predicated region fallthrough
CT: control target
= control target key end

     0   :  { %11 = vsyncpa [#allocation3], 0  ;;  %s573_s0 = inlined_call_operand.hbm [shape: f32[16,128], index: 0, kind: input, shape index: {}]   ;;  %s574_s1 = inlined_call_operand.hbm [shape: f32[128,128], index: 1, kind: input, shape index: {}]   ;;  %s575_s2 = inlined_call_operand.hbm [shape: f32[128,128], index: 2, kind: input, shape index: {}]   ;;  %s576_s3 = inlined_call_operand.hbm [shape: f32[16,128], index: 3, kind: output, shape index: {0}]   ;;  %s577_s4 = inlined_call_operand.vmem [shape: s32[16,1], index: 4, kind: output, shape index: {1}]   ;;  %s578_s5 = inlined_call_operand.hbm [shape: f32[8,128], index: 5, kind: output, shape index: {2}]  }
   0x1   :  { %12 = vsyncpa [#allocation6], 0 }
   0x2   :  { %13 = vsyncpa [#allocation4], 0 }
   0x3   :  { %14 = vsyncpa [#allocation10], 0  ;;  %s32_s20 = sshll.u32 %s574_s1, 4  ;;  %s473_s21 = smov [#allocation5]   ;;  %s33_s20 = int_to_ptr.hbm [resolvable:$true] %s32_s20 }
   0x4   :  { %s34_s22 = sshll.u32 %s473_s21, 4  ;;  %s19_s25 = sshll.u32 %s573_s0, 4  ;;  %s35_s22 = int_to_ptr.vmem [resolvable:$true] %s34_s22  ;;  %s20_s25 = int_to_ptr.hbm [resolvable:$true] %s19_s25 }
   0x5   :  { %s474_s26 = smov 128   ;;  %s475_s27 = smov 8  }
   0x6   :  { %40 = dma.hbm_to_vmem [thread:$0]  %s33_s20, 2048, %s35_s22, [#allocation6], %s474_s26, %s474_s26, %s475_s27  }
   0x7   :  { %s476_s28 = smov [#allocation2]   ;;  %s45_s1 = sshll.u32 %s575_s2, 4  ;;  %s46_s1 = int_to_ptr.hbm [resolvable:$true] %s45_s1 }
   0x8   :  { %s21_s29 = sshll.u32 %s476_s28, 4  ;;  %s477_s0 = smov [#allocation7]   ;;  %s22_s29 = int_to_ptr.vmem [resolvable:$true] %s21_s29 }
   0x9   :  { %27 = dma.hbm_to_vmem [thread:$0]  %s20_s25, 256, %s22_s29, [#allocation3], %s474_s26, %s474_s26, %s475_s27  }
   0xa   :  { %s47_s7 = sshll.u32 %s477_s0, 4  ;;  %s48_s7 = int_to_ptr.vmem [resolvable:$true] %s47_s7 }
   0xb   :  { %53 = dma.hbm_to_vmem [thread:$0]  %s46_s1, 2048, %s48_s7, [#allocation6], %s474_s26, %s474_s26, %s475_s27  }
   0xc   :  { %465 = dma.done.wait [#allocation3], 256  }
   0xd   :  { %466 = vsyncadd [#allocation3], 4294967040 }
   0xe   :  { %467 = dma.done.wait [#allocation6], 4096  }
   0xf   :  { %468 = vsyncadd [#allocation6], 4294963200  ;;  %v529_v0 = vld [vmem:[#allocation2 + $0x8] sm:$0xff]  ;;  %v112_v3 = vld [vmem:[#allocation5 + $0x70] sm:$0xff]  ;;  %v137_v40 = vlaneseq  ;;  %vm225_vm9 = vcmask 7168   ;;  %s479_s12 = smov [#allocation9]  }
  0x10   :  { %v113_v1 = vld [vmem:[#allocation5 + $0x78] sm:$0xff]  ;;  %v69_v2 = vmul.f32 %v529_v0, %v529_v0  ;;  %v111_v4 = vld [vmem:[#allocation5 + $0x68] sm:$0xff]  ;;  %v533_v5 = vld [vmem:[#allocation2] sm:$0xff]  ;;  %s275_s13 = sshll.u32 %s479_s12, 4  ;;  %s277_s16 = sshll.u32 %s578_s5, 4  ;;  %s276_s13 = int_to_ptr.vmem [resolvable:$true] %s275_s13  ;;  %s278_s16 = int_to_ptr.hbm [resolvable:$true] %s277_s16 }
  0x11   :  { %299 = vmatpush.msra.mxu2 %v113_v1  ;;  %114 = vmatpush.msra.mxu0 %v113_v1  ;;  %v110_v6 = vld [vmem:[#allocation5 + $0x60] sm:$0xff]  ;;  %v109_v7 = vld [vmem:[#allocation5 + $0x58] sm:$0xff]  ;;  %v68_v8 = vmul.f32 %v533_v5, %v533_v5  ;;  %v108_v9 = vld [vmem:[#allocation5 + $0x50] sm:$0xff]  ;;  %v539_v41 = vand.u32 127, %v137_v40  ;;  %s480_s17 = smov [#allocation8]   ;;  %s261_s21 = sshll.u32 %s576_s3, 4  ;;  %s262_s21 = int_to_ptr.hbm [resolvable:$true] %s261_s21 }
  0x12   :  { %72 = vadd.xlane.f32.xlu0 %v69_v2  ;;  %v107_v10 = vld [vmem:[#allocation5 + $0x48] sm:$0xff]  ;;  %v106_v11 = vld [vmem:[#allocation5 + $0x40] sm:$0xff]  ;;  %v105_v12 = vld [vmem:[#allocation5 + $0x38] sm:$0xff]  ;;  %s259_s18 = sshll.u32 %s480_s17, 4  ;;  %s260_s18 = int_to_ptr.vmem [resolvable:$true] %s259_s18 }
  0x13   :  { %300 = vmatpush.msra.mxu2 %v112_v3  ;;  %115 = vmatpush.msra.mxu0 %v112_v3  ;;  %v104_v13 = vld [vmem:[#allocation5 + $0x30] sm:$0xff]  ;;  %v103_v14 = vld [vmem:[#allocation5 + $0x28] sm:$0xff]  ;;  %v102_v15 = vld [vmem:[#allocation5 + $0x20] sm:$0xff]  ;;  %vm139_vm6 = vcmp.lt.s32.totalorder %v539_v41, 16 }
  0x14   :  { %v101_v16 = vld [vmem:[#allocation5 + $0x18] sm:$0xff]  ;;  %v100_v17 = vld [vmem:[#allocation5 + $0x10] sm:$0xff]  ;;  %v99_v18 = vld [vmem:[#allocation5 + $0x8] sm:$0xff] }
  0x15   :  { %301 = vmatpush.msra.mxu2 %v111_v4  ;;  %116 = vmatpush.msra.mxu0 %v111_v4  ;;  %v98_v19 = vld [vmem:[#allocation5] sm:$0xff] }
  0x17   :  { %302 = vmatpush.msra.mxu2 %v110_v6  ;;  %117 = vmatpush.msra.mxu0 %v110_v6 }
  0x19   :  { %303 = vmatpush.msra.mxu2 %v109_v7  ;;  %118 = vmatpush.msra.mxu0 %v109_v7 }
  0x1a   :  { %70 = vadd.xlane.f32.xlu0 %v68_v8 }
  0x1b   :  { %304 = vmatpush.msra.mxu2 %v108_v9  ;;  %119 = vmatpush.msra.mxu0 %v108_v9 }
  0x1d   :  { %305 = vmatpush.msra.mxu2 %v107_v10  ;;  %120 = vmatpush.msra.mxu0 %v107_v10  ;;  %v199_v10 = vld [vmem:[#allocation7 + $0x78] sm:$0xff] }
  0x1e   :  { %315 = vmatpush.msra.mxu3 %v199_v10  ;;  %200 = vmatpush.msra.mxu1 %v199_v10 }
  0x1f   :  { %306 = vmatpush.msra.mxu2 %v106_v11  ;;  %121 = vmatpush.msra.mxu0 %v106_v11  ;;  %v198_v11 = vld [vmem:[#allocation7 + $0x70] sm:$0xff] }
  0x20   :  { %316 = vmatpush.msra.mxu3 %v198_v11  ;;  %201 = vmatpush.msra.mxu1 %v198_v11 }
  0x21   :  { %307 = vmatpush.msra.mxu2 %v105_v12  ;;  %122 = vmatpush.msra.mxu0 %v105_v12  ;;  %v197_v12 = vld [vmem:[#allocation7 + $0x68] sm:$0xff] }
  0x22   :  { %317 = vmatpush.msra.mxu3 %v197_v12  ;;  %202 = vmatpush.msra.mxu1 %v197_v12 }
  0x23   :  { %308 = vmatpush.msra.mxu2 %v104_v13  ;;  %123 = vmatpush.msra.mxu0 %v104_v13  ;;  %v196_v13 = vld [vmem:[#allocation7 + $0x60] sm:$0xff] }
  0x24   :  { %318 = vmatpush.msra.mxu3 %v196_v13  ;;  %203 = vmatpush.msra.mxu1 %v196_v13 }
  0x25   :  { %309 = vmatpush.msra.mxu2 %v103_v14  ;;  %124 = vmatpush.msra.mxu0 %v103_v14  ;;  %v195_v14 = vld [vmem:[#allocation7 + $0x58] sm:$0xff] }
  0x26   :  { %319 = vmatpush.msra.mxu3 %v195_v14  ;;  %204 = vmatpush.msra.mxu1 %v195_v14 }
  0x27   :  { %310 = vmatpush.msra.mxu2 %v102_v15  ;;  %125 = vmatpush.msra.mxu0 %v102_v15  ;;  %v194_v15 = vld [vmem:[#allocation7 + $0x50] sm:$0xff] }
  0x28   :  { %320 = vmatpush.msra.mxu3 %v194_v15  ;;  %205 = vmatpush.msra.mxu1 %v194_v15 }
  0x29   :  { %311 = vmatpush.msra.mxu2 %v101_v16  ;;  %126 = vmatpush.msra.mxu0 %v101_v16  ;;  %v193_v16 = vld [vmem:[#allocation7 + $0x48] sm:$0xff] }
  0x2a   :  { %321 = vmatpush.msra.mxu3 %v193_v16  ;;  %206 = vmatpush.msra.mxu1 %v193_v16 }
  0x2b   :  { %312 = vmatpush.msra.mxu2 %v100_v17  ;;  %127 = vmatpush.msra.mxu0 %v100_v17  ;;  %v192_v17 = vld [vmem:[#allocation7 + $0x40] sm:$0xff] }
  0x2c   :  { %322 = vmatpush.msra.mxu3 %v192_v17  ;;  %207 = vmatpush.msra.mxu1 %v192_v17 }
  0x2d   :  { %313 = vmatpush.msra.mxu2 %v99_v18  ;;  %128 = vmatpush.msra.mxu0 %v99_v18  ;;  %v191_v18 = vld [vmem:[#allocation7 + $0x38] sm:$0xff] }
  0x2e   :  { %323 = vmatpush.msra.mxu3 %v191_v18  ;;  %208 = vmatpush.msra.mxu1 %v191_v18 }
  0x2f   :  { %314 = vmatpush.msra.mxu2 %v98_v19  ;;  %129 = vmatpush.msra.mxu0 %v98_v19  ;;  %v190_v19 = vld [vmem:[#allocation7 + $0x30] sm:$0xff] }
  0x30   :  { %324 = vmatpush.msra.mxu3 %v190_v19  ;;  %209 = vmatpush.msra.mxu1 %v190_v19 }
  0x85   :  { %v73_v20 = vpop.xlane.xlu0 %72 }
  0x86   :  { %v75_v21 = vmax.f32 %v73_v20, 1e-24  ;;  %v189_v20 = vld [vmem:[#allocation7 + $0x28] sm:$0xff] }
  0x87   :  { %325 = vmatpush.msra.mxu3 %v189_v20  ;;  %210 = vmatpush.msra.mxu1 %v189_v20 }
  0x88   :  { %341 = vrsqrt.f32 %v75_v21  ;;  %vm92_vm1 = vweird.f32 %v75_v21 }
  0x8d   :  { %v71_v22 = vpop.xlane.xlu0 %70 }
  0x8e   :  { %v342_v23 = vpop.eup %341  ;;  %v74_v24 = vmax.f32 %v71_v22, 1e-24  ;;  %v187_v22 = vld [vmem:[#allocation7 + $0x18] sm:$0xff] }
  0x8f   :  { %v87_v25 = vmul.f32 %v342_v23, %v75_v21  ;;  %vm93_vm0 = vweird.f32 %v342_v23  ;;  %v188_v21 = vld [vmem:[#allocation7 + $0x20] sm:$0xff] }
  0x90   :  { %343 = vrsqrt.f32 %v74_v24  ;;  %vm94_vm2 = vmor %vm92_vm1, %vm93_vm0  ;;  %vm82_vm3 = vweird.f32 %v74_v24  ;;  %326 = vmatpush.msra.mxu3 %v188_v21  ;;  %211 = vmatpush.msra.mxu1 %v188_v21 }
  0x91   :  { %v88_v26 = vmul.f32 %v342_v23, %v87_v25  ;;  %v185_v25 = vld [vmem:[#allocation7 + $0x8] sm:$0xff] }
  0x92   :  { %327 = vmatpush.msra.mxu3 %v187_v22  ;;  %212 = vmatpush.msra.mxu1 %v187_v22 }
  0x93   :  { %v89_v27 = vmul.f32 0.5, %v88_v26  ;;  %v184_v26 = vld [vmem:[#allocation7] sm:$0xff] }
  0x95   :  { %v90_v28 = vsub.f32 1.5, %v89_v27 }
  0x96   :  { %v344_v29 = vpop.eup %343 }
  0x97   :  { %v77_v30 = vmul.f32 %v344_v29, %v74_v24  ;;  %v91_v31 = vmul.f32 %v342_v23, %v90_v28  ;;  %vm83_vm4 = vweird.f32 %v344_v29  ;;  %v186_v24 = vld [vmem:[#allocation7 + $0x10] sm:$0xff] }
  0x98   :  { %vm84_vm5 = vmor %vm82_vm3, %vm83_vm4  ;;  %328 = vmatpush.msra.mxu3 %v186_v24  ;;  %213 = vmatpush.msra.mxu1 %v186_v24 }
  0x99   :  { %v78_v32 = vmul.f32 %v344_v29, %v77_v30  ;;  %v95_v33 = vsel %vm94_vm2, %v342_v23, %v91_v31 }
  0x9a   :  { %v97_v34 = vmul.f32 %v95_v33, %v529_v0  ;;  %329 = vmatpush.msra.mxu3 %v185_v25  ;;  %214 = vmatpush.msra.mxu1 %v185_v25  ;;  %v478_v33 = vmov 1.0  }
  0x9b   :  { %v79_v35 = vmul.f32 0.5, %v78_v32 }
  0x9c   :  { %133 = vmatmul.f32.vlgmr.msra.gmra.mxu2 %v97_v34  ;;  %330 = vmatpush.msra.mxu3 %v184_v26 }
  0x9d   :  { %v80_v36 = vsub.f32 1.5, %v79_v35  ;;  %215 = vmatpush.msra.mxu1 %v184_v26 }
  0x9f   :  { %v81_v37 = vmul.f32 %v344_v29, %v80_v36 }
  0xa1   :  { %v85_v38 = vsel %vm84_vm5, %v344_v29, %v81_v37 }
  0xa2   :  { %v96_v39 = vmul.f32 %v85_v38, %v533_v5 }
  0xa4   :  { %130 = vmatmul.f32.vlgmr.msra.gmra.mxu0 %v96_v39 }
 0x11f   :  { %v134_v42 = vpop.f32.mrf.mxu2 }
 0x120   :  { %v141_v43 = vsel %vm139_vm6, %v134_v42, -inf }
 0x121   :  { %144 = vmax.xlane.f32.xlu1 %v141_v43  ;;  %v131_v44 = vpop.f32.mrf.mxu0 }
 0x122   :  { %v140_v45 = vsel %vm139_vm6, %v131_v44, -inf }
 0x129   :  { %142 = vmax.xlane.f32.xlu1 %v140_v45 }
 0x194   :  { %v145_v46 = vpop.xlane.xlu1 %144 }
 0x195   :  { %vm147_vm7 = vcmp.eq.f32.partialorder %v141_v43, %v145_v46  ;;  %v238_v55 = vsub.f32 1.0, %v145_v46 }
 0x196   :  { %v149_v47 = vsel %vm147_vm7, %v539_v41, 128 }
 0x197   :  { %v165_v48 = vshra.s32 %v149_v47, 16  ;;  %v242_v57 = vsel %vm225_vm9, %v238_v55, 0.0  ;;  %v164_v59 = vand.u32 65535, %v149_v47 }
 0x199   :  { %v167_v49 = vcvt.s32.f32 %v165_v48  ;;  %v166_v61 = vcvt.s32.f32 %v164_v59 }
 0x19b   :  { %168 = vmin.xlane.f32.xlu2 %v167_v49 }
 0x19c   :  { %v143_v50 = vpop.xlane.xlu1 %142 }
 0x19d   :  { %vm146_vm8 = vcmp.eq.f32.partialorder %v140_v45, %v143_v50  ;;  %v237_v54 = vsub.f32 1.0, %v143_v50 }
 0x19e   :  { %v148_v51 = vsel %vm146_vm8, %v539_v41, 128 }
 0x19f   :  { %v151_v52 = vshra.s32 %v148_v51, 16  ;;  %v241_v56 = vsel %vm225_vm9, %v237_v54, 0.0  ;;  %v150_v63 = vand.u32 65535, %v148_v51 }
 0x1a0   :  { %v243_v58 = vadd.f32 %v242_v57, %v241_v56 }
 0x1a1   :  { %v153_v53 = vcvt.s32.f32 %v151_v52  ;;  %v152_v1 = vcvt.s32.f32 %v150_v63 }
 0x1a3   :  { %154 = vmin.xlane.f32.xlu2 %v153_v53 }
 0x1ab   :  { %244 = vadd.xlane.f32.xlu2 %v243_v58 }
 0x20e   :  { %v546_v60 = vpop.xlane.xlu2 %168 }
 0x20f   :  { %vm170_vm10 = vcmp.eq.f32.partialorder %v167_v49, %v546_v60  ;;  %v175_v27 = vcvt.f32.s32 %v546_v60 }
 0x210   :  { %v171_v62 = vsel %vm170_vm10, %v166_v61, inf }
 0x211   :  { %172 = vmin.xlane.f32.xlu0 %v171_v62  ;;  %v176_v29 = vshll.u32 %v175_v27, 16 }
 0x216   :  { %v549_v0 = vpop.xlane.xlu2 %154 }
 0x217   :  { %vm156_vm11 = vcmp.eq.f32.partialorder %v153_v53, %v549_v0  ;;  %v161_v32 = vcvt.f32.s32 %v549_v0 }
 0x218   :  { %v157_v2 = vsel %vm156_vm11, %v152_v1, inf }
 0x219   :  { %158 = vmin.xlane.f32.xlu1 %v157_v2  ;;  %v162_v35 = vshll.u32 %v161_v32, 16 }
 0x21e   :  { %v245_v3 = vpop.xlane.xlu2 %244 }
 0x21f   :  { %v246_v4 = vrot.slane %v245_v3, 4 }
 0x221   :  { %v247_v5 = vadd.f32 %v246_v4, %v245_v3 }
 0x223   :  { %v248_v6 = vrot.slane %v247_v5, 2 }
 0x225   :  { %v249_v7 = vadd.f32 %v248_v6, %v247_v5 }
 0x227   :  { %v250_v8 = vrot.slane %v249_v7, 1 }
 0x229   :  { %v251_v9 = vadd.f32 %v250_v8, %v249_v7 }
 0x22b   :  { %331 = vpush %v251_v9 }
 0x25c   :  { %s332_s2 = spop %331 }
 0x25d   :  { %v253_v23 = vstv %s332_s2 }
 0x25e   :  { %254 = vst [vmem:[#allocation9] sm:$0xff] %v253_v23 }
 0x25f   :  { %280 = dma.vmem_to_hbm [thread:$0]  %s276_s13, 128, %s278_s16, [#allocation10]  }
 0x284   :  { %v173_v28 = vpop.xlane.xlu0 %172 }
 0x285   :  { %v174_v30 = vcvt.f32.s32 %v173_v28 }
 0x287   :  { %v177_v31 = vadd.s32 %v176_v29, %v174_v30 }
 0x289   :  { %227 = vst.msk [vmem:[%s577_s4 + $0x8] sm:$0xff] %vm225_vm9, %v177_v31  ;;  %vm179_vm12 = vcmp.eq.s32.totalorder %v539_v41, %v177_v31 }
 0x28a   :  { %298 = vmatmul.msk.f32.vlgmr.msra.gmra.mxu3 %vm179_vm12, %v478_v33 }
 0x28c   :  { %v159_v34 = vpop.xlane.xlu1 %158 }
 0x28d   :  { %v160_v36 = vcvt.f32.s32 %v159_v34 }
 0x28f   :  { %v163_v37 = vadd.s32 %v162_v35, %v160_v36 }
 0x291   :  { %226 = vst.msk [vmem:[%s577_s4] sm:$0xff] %vm225_vm9, %v163_v37  ;;  %vm178_vm13 = vcmp.eq.s32.totalorder %v539_v41, %v163_v37 }
 0x292   :  { %297 = vmatmul.msk.f32.vlgmr.msra.gmra.mxu1 %vm178_vm13, %v478_v33 }
 0x30d   :  { %v220_v38 = vpop.f32.mrf.mxu3 }
 0x30e   :  { %224 = vst [vmem:[#allocation8 + $0x8] sm:$0xff] %v220_v38 }
 0x30f   :  { %v217_v39 = vpop.f32.mrf.mxu1 }
 0x310   :  { %223 = vst [vmem:[#allocation8] sm:$0xff] %v217_v39 }
 0x311   :  { %267 = dma.vmem_to_hbm [thread:$0]  %s260_s18, 256, %s262_s21, [#allocation4], %s474_s26, %s474_s26, %s475_s27  }
 0x312   :  { %469 = dma.done.wait [#allocation4], 256  }
 0x313   :  { %470 = vsyncadd [#allocation4], 4294967040 }
 0x314   :  { %471 = dma.done.wait [#allocation10], 128  }
 0x315   :  { %472 = vsyncadd [#allocation10], 4294967168 }
 0x316   :  { %291 = vsyncpa [#allocation3], 1 }
 0x317   :  { %292 = vsyncpa [#allocation6], 1 }
 0x318   :  { %293 = vsyncpa [#allocation4], 1 }
 0x319   :  { %294 = vsyncpa [#allocation10], 1 }

// kernel: tpu_custom_call.1
= control target key start
LH: loop header
LB: loop body
LE: loop exit
PB: predicated region body
PF: predicated region fallthrough
CT: control target
= control target key end

     0   :  { %11 = vsyncpa [#allocation3], 0  ;;  %s573_s0 = inlined_call_operand.hbm [shape: f32[16,128], index: 0, kind: input, shape index: {}]   ;;  %s574_s1 = inlined_call_operand.hbm [shape: f32[128,128], index: 1, kind: input, shape index: {}]   ;;  %s575_s2 = inlined_call_operand.hbm [shape: f32[128,128], index: 2, kind: input, shape index: {}]   ;;  %s576_s3 = inlined_call_operand.hbm [shape: f32[16,128], index: 3, kind: output, shape index: {0}]   ;;  %s577_s4 = inlined_call_operand.vmem [shape: s32[16,1], index: 4, kind: output, shape index: {1}]   ;;  %s578_s5 = inlined_call_operand.hbm [shape: f32[8,128], index: 5, kind: output, shape index: {2}]  }
   0x1   :  { %12 = vsyncpa [#allocation6], 0 }
   0x2   :  { %13 = vsyncpa [#allocation4], 0 }
   0x3   :  { %14 = vsyncpa [#allocation10], 0  ;;  %s32_s20 = sshll.u32 %s574_s1, 4  ;;  %s473_s21 = smov [#allocation5]   ;;  %s33_s20 = int_to_ptr.hbm [resolvable:$true] %s32_s20 }
   0x4   :  { %s34_s22 = sshll.u32 %s473_s21, 4  ;;  %s19_s25 = sshll.u32 %s573_s0, 4  ;;  %s35_s22 = int_to_ptr.vmem [resolvable:$true] %s34_s22  ;;  %s20_s25 = int_to_ptr.hbm [resolvable:$true] %s19_s25 }
   0x5   :  { %s474_s26 = smov 128   ;;  %s475_s27 = smov 8  }
   0x6   :  { %40 = dma.hbm_to_vmem [thread:$0]  %s33_s20, 2048, %s35_s22, [#allocation6], %s474_s26, %s474_s26, %s475_s27  }
   0x7   :  { %s476_s28 = smov [#allocation2]   ;;  %s45_s1 = sshll.u32 %s575_s2, 4  ;;  %s46_s1 = int_to_ptr.hbm [resolvable:$true] %s45_s1 }
   0x8   :  { %s21_s29 = sshll.u32 %s476_s28, 4  ;;  %s477_s0 = smov [#allocation7]   ;;  %s22_s29 = int_to_ptr.vmem [resolvable:$true] %s21_s29 }
   0x9   :  { %27 = dma.hbm_to_vmem [thread:$0]  %s20_s25, 256, %s22_s29, [#allocation3], %s474_s26, %s474_s26, %s475_s27  }
   0xa   :  { %s47_s7 = sshll.u32 %s477_s0, 4  ;;  %s48_s7 = int_to_ptr.vmem [resolvable:$true] %s47_s7 }
   0xb   :  { %53 = dma.hbm_to_vmem [thread:$0]  %s46_s1, 2048, %s48_s7, [#allocation6], %s474_s26, %s474_s26, %s475_s27  }
   0xc   :  { %465 = dma.done.wait [#allocation3], 256  }
   0xd   :  { %466 = vsyncadd [#allocation3], 4294967040 }
   0xe   :  { %467 = dma.done.wait [#allocation6], 4096  }
   0xf   :  { %468 = vsyncadd [#allocation6], 4294963200  ;;  %v529_v0 = vld [vmem:[#allocation2 + $0x8] sm:$0xff]  ;;  %v112_v3 = vld [vmem:[#allocation5 + $0x70] sm:$0xff]  ;;  %v137_v40 = vlaneseq  ;;  %vm225_vm9 = vcmask 7168   ;;  %s479_s12 = smov [#allocation9]  }
  0x10   :  { %v113_v1 = vld [vmem:[#allocation5 + $0x78] sm:$0xff]  ;;  %v69_v2 = vmul.f32 %v529_v0, %v529_v0  ;;  %v111_v4 = vld [vmem:[#allocation5 + $0x68] sm:$0xff]  ;;  %v533_v5 = vld [vmem:[#allocation2] sm:$0xff]  ;;  %s275_s13 = sshll.u32 %s479_s12, 4  ;;  %s277_s16 = sshll.u32 %s578_s5, 4  ;;  %s276_s13 = int_to_ptr.vmem [resolvable:$true] %s275_s13  ;;  %s278_s16 = int_to_ptr.hbm [resolvable:$true] %s277_s16 }
  0x11   :  { %299 = vmatpush.msra.mxu2 %v113_v1  ;;  %114 = vmatpush.msra.mxu0 %v113_v1  ;;  %v110_v6 = vld [vmem:[#allocation5 + $0x60] sm:$0xff]  ;;  %v109_v7 = vld [vmem:[#allocation5 + $0x58] sm:$0xff]  ;;  %v68_v8 = vmul.f32 %v533_v5, %v533_v5  ;;  %v108_v9 = vld [vmem:[#allocation5 + $0x50] sm:$0xff]  ;;  %v539_v41 = vand.u32 127, %v137_v40  ;;  %s480_s17 = smov [#allocation8]   ;;  %s261_s21 = sshll.u32 %s576_s3, 4  ;;  %s262_s21 = int_to_ptr.hbm [resolvable:$true] %s261_s21 }
  0x12   :  { %72 = vadd.xlane.f32.xlu0 %v69_v2  ;;  %v107_v10 = vld [vmem:[#allocation5 + $0x48] sm:$0xff]  ;;  %v106_v11 = vld [vmem:[#allocation5 + $0x40] sm:$0xff]  ;;  %v105_v12 = vld [vmem:[#allocation5 + $0x38] sm:$0xff]  ;;  %s259_s18 = sshll.u32 %s480_s17, 4  ;;  %s260_s18 = int_to_ptr.vmem [resolvable:$true] %s259_s18 }
  0x13   :  { %300 = vmatpush.msra.mxu2 %v112_v3  ;;  %115 = vmatpush.msra.mxu0 %v112_v3  ;;  %v104_v13 = vld [vmem:[#allocation5 + $0x30] sm:$0xff]  ;;  %v103_v14 = vld [vmem:[#allocation5 + $0x28] sm:$0xff]  ;;  %v102_v15 = vld [vmem:[#allocation5 + $0x20] sm:$0xff]  ;;  %vm139_vm6 = vcmp.lt.s32.totalorder %v539_v41, 16 }
  0x14   :  { %v101_v16 = vld [vmem:[#allocation5 + $0x18] sm:$0xff]  ;;  %v100_v17 = vld [vmem:[#allocation5 + $0x10] sm:$0xff]  ;;  %v99_v18 = vld [vmem:[#allocation5 + $0x8] sm:$0xff] }
  0x15   :  { %301 = vmatpush.msra.mxu2 %v111_v4  ;;  %116 = vmatpush.msra.mxu0 %v111_v4  ;;  %v98_v19 = vld [vmem:[#allocation5] sm:$0xff] }
  0x17   :  { %302 = vmatpush.msra.mxu2 %v110_v6  ;;  %117 = vmatpush.msra.mxu0 %v110_v6 }
  0x19   :  { %303 = vmatpush.msra.mxu2 %v109_v7  ;;  %118 = vmatpush.msra.mxu0 %v109_v7 }
  0x1a   :  { %70 = vadd.xlane.f32.xlu0 %v68_v8 }
  0x1b   :  { %304 = vmatpush.msra.mxu2 %v108_v9  ;;  %119 = vmatpush.msra.mxu0 %v108_v9 }
  0x1d   :  { %305 = vmatpush.msra.mxu2 %v107_v10  ;;  %120 = vmatpush.msra.mxu0 %v107_v10  ;;  %v199_v10 = vld [vmem:[#allocation7 + $0x78] sm:$0xff] }
  0x1e   :  { %315 = vmatpush.msra.mxu3 %v199_v10  ;;  %200 = vmatpush.msra.mxu1 %v199_v10 }
  0x1f   :  { %306 = vmatpush.msra.mxu2 %v106_v11  ;;  %121 = vmatpush.msra.mxu0 %v106_v11  ;;  %v198_v11 = vld [vmem:[#allocation7 + $0x70] sm:$0xff] }
  0x20   :  { %316 = vmatpush.msra.mxu3 %v198_v11  ;;  %201 = vmatpush.msra.mxu1 %v198_v11 }
  0x21   :  { %307 = vmatpush.msra.mxu2 %v105_v12  ;;  %122 = vmatpush.msra.mxu0 %v105_v12  ;;  %v197_v12 = vld [vmem:[#allocation7 + $0x68] sm:$0xff] }
  0x22   :  { %317 = vmatpush.msra.mxu3 %v197_v12  ;;  %202 = vmatpush.msra.mxu1 %v197_v12 }
  0x23   :  { %308 = vmatpush.msra.mxu2 %v104_v13  ;;  %123 = vmatpush.msra.mxu0 %v104_v13  ;;  %v196_v13 = vld [vmem:[#allocation7 + $0x60] sm:$0xff] }
  0x24   :  { %318 = vmatpush.msra.mxu3 %v196_v13  ;;  %203 = vmatpush.msra.mxu1 %v196_v13 }
  0x25   :  { %309 = vmatpush.msra.mxu2 %v103_v14  ;;  %124 = vmatpush.msra.mxu0 %v103_v14  ;;  %v195_v14 = vld [vmem:[#allocation7 + $0x58] sm:$0xff] }
  0x26   :  { %319 = vmatpush.msra.mxu3 %v195_v14  ;;  %204 = vmatpush.msra.mxu1 %v195_v14 }
  0x27   :  { %310 = vmatpush.msra.mxu2 %v102_v15  ;;  %125 = vmatpush.msra.mxu0 %v102_v15  ;;  %v194_v15 = vld [vmem:[#allocation7 + $0x50] sm:$0xff] }
  0x28   :  { %320 = vmatpush.msra.mxu3 %v194_v15  ;;  %205 = vmatpush.msra.mxu1 %v194_v15 }
  0x29   :  { %311 = vmatpush.msra.mxu2 %v101_v16  ;;  %126 = vmatpush.msra.mxu0 %v101_v16  ;;  %v193_v16 = vld [vmem:[#allocation7 + $0x48] sm:$0xff] }
  0x2a   :  { %321 = vmatpush.msra.mxu3 %v193_v16  ;;  %206 = vmatpush.msra.mxu1 %v193_v16 }
  0x2b   :  { %312 = vmatpush.msra.mxu2 %v100_v17  ;;  %127 = vmatpush.msra.mxu0 %v100_v17  ;;  %v192_v17 = vld [vmem:[#allocation7 + $0x40] sm:$0xff] }
  0x2c   :  { %322 = vmatpush.msra.mxu3 %v192_v17  ;;  %207 = vmatpush.msra.mxu1 %v192_v17 }
  0x2d   :  { %313 = vmatpush.msra.mxu2 %v99_v18  ;;  %128 = vmatpush.msra.mxu0 %v99_v18  ;;  %v191_v18 = vld [vmem:[#allocation7 + $0x38] sm:$0xff] }
  0x2e   :  { %323 = vmatpush.msra.mxu3 %v191_v18  ;;  %208 = vmatpush.msra.mxu1 %v191_v18 }
  0x2f   :  { %314 = vmatpush.msra.mxu2 %v98_v19  ;;  %129 = vmatpush.msra.mxu0 %v98_v19  ;;  %v190_v19 = vld [vmem:[#allocation7 + $0x30] sm:$0xff] }
  0x30   :  { %324 = vmatpush.msra.mxu3 %v190_v19  ;;  %209 = vmatpush.msra.mxu1 %v190_v19 }
  0x85   :  { %v73_v20 = vpop.xlane.xlu0 %72 }
  0x86   :  { %v75_v21 = vmax.f32 %v73_v20, 1e-24  ;;  %v189_v20 = vld [vmem:[#allocation7 + $0x28] sm:$0xff] }
  0x87   :  { %325 = vmatpush.msra.mxu3 %v189_v20  ;;  %210 = vmatpush.msra.mxu1 %v189_v20 }
  0x88   :  { %341 = vrsqrt.f32 %v75_v21  ;;  %vm92_vm1 = vweird.f32 %v75_v21 }
  0x8d   :  { %v71_v22 = vpop.xlane.xlu0 %70 }
  0x8e   :  { %v342_v23 = vpop.eup %341  ;;  %v74_v24 = vmax.f32 %v71_v22, 1e-24  ;;  %v187_v22 = vld [vmem:[#allocation7 + $0x18] sm:$0xff] }
  0x8f   :  { %v87_v25 = vmul.f32 %v342_v23, %v75_v21  ;;  %vm93_vm0 = vweird.f32 %v342_v23  ;;  %v188_v21 = vld [vmem:[#allocation7 + $0x20] sm:$0xff] }
  0x90   :  { %343 = vrsqrt.f32 %v74_v24  ;;  %vm94_vm2 = vmor %vm92_vm1, %vm93_vm0  ;;  %vm82_vm3 = vweird.f32 %v74_v24  ;;  %326 = vmatpush.msra.mxu3 %v188_v21  ;;  %211 = vmatpush.msra.mxu1 %v188_v21 }
  0x91   :  { %v88_v26 = vmul.f32 %v342_v23, %v87_v25  ;;  %v185_v25 = vld [vmem:[#allocation7 + $0x8] sm:$0xff] }
  0x92   :  { %327 = vmatpush.msra.mxu3 %v187_v22  ;;  %212 = vmatpush.msra.mxu1 %v187_v22 }
  0x93   :  { %v89_v27 = vmul.f32 0.5, %v88_v26  ;;  %v184_v26 = vld [vmem:[#allocation7] sm:$0xff] }
  0x95   :  { %v90_v28 = vsub.f32 1.5, %v89_v27 }
  0x96   :  { %v344_v29 = vpop.eup %343 }
  0x97   :  { %v77_v30 = vmul.f32 %v344_v29, %v74_v24  ;;  %v91_v31 = vmul.f32 %v342_v23, %v90_v28  ;;  %vm83_vm4 = vweird.f32 %v344_v29  ;;  %v186_v24 = vld [vmem:[#allocation7 + $0x10] sm:$0xff] }
  0x98   :  { %vm84_vm5 = vmor %vm82_vm3, %vm83_vm4  ;;  %328 = vmatpush.msra.mxu3 %v186_v24  ;;  %213 = vmatpush.msra.mxu1 %v186_v24 }
  0x99   :  { %v78_v32 = vmul.f32 %v344_v29, %v77_v30  ;;  %v95_v33 = vsel %vm94_vm2, %v342_v23, %v91_v31 }
  0x9a   :  { %v97_v34 = vmul.f32 %v95_v33, %v529_v0  ;;  %329 = vmatpush.msra.mxu3 %v185_v25  ;;  %214 = vmatpush.msra.mxu1 %v185_v25  ;;  %v478_v33 = vmov 1.0  }
  0x9b   :  { %v79_v35 = vmul.f32 0.5, %v78_v32 }
  0x9c   :  { %133 = vmatmul.f32.vlgmr.msra.gmra.mxu2 %v97_v34  ;;  %330 = vmatpush.msra.mxu3 %v184_v26 }
  0x9d   :  { %v80_v36 = vsub.f32 1.5, %v79_v35  ;;  %215 = vmatpush.msra.mxu1 %v184_v26 }
  0x9f   :  { %v81_v37 = vmul.f32 %v344_v29, %v80_v36 }
  0xa1   :  { %v85_v38 = vsel %vm84_vm5, %v344_v29, %v81_v37 }
  0xa2   :  { %v96_v39 = vmul.f32 %v85_v38, %v533_v5 }
  0xa4   :  { %130 = vmatmul.f32.vlgmr.msra.gmra.mxu0 %v96_v39 }
 0x11f   :  { %v134_v42 = vpop.f32.mrf.mxu2 }
 0x120   :  { %v141_v43 = vsel %vm139_vm6, %v134_v42, -inf }
 0x121   :  { %144 = vmax.xlane.f32.xlu1 %v141_v43  ;;  %v131_v44 = vpop.f32.mrf.mxu0 }
 0x122   :  { %v140_v45 = vsel %vm139_vm6, %v131_v44, -inf }
 0x129   :  { %142 = vmax.xlane.f32.xlu1 %v140_v45 }
 0x194   :  { %v145_v46 = vpop.xlane.xlu1 %144 }
 0x195   :  { %vm147_vm7 = vcmp.eq.f32.partialorder %v141_v43, %v145_v46  ;;  %v238_v55 = vsub.f32 1.0, %v145_v46 }
 0x196   :  { %v149_v47 = vsel %vm147_vm7, %v539_v41, 128 }
 0x197   :  { %v165_v48 = vshra.s32 %v149_v47, 16  ;;  %v242_v57 = vsel %vm225_vm9, %v238_v55, 0.0  ;;  %v164_v59 = vand.u32 65535, %v149_v47 }
 0x199   :  { %v167_v49 = vcvt.s32.f32 %v165_v48  ;;  %v166_v61 = vcvt.s32.f32 %v164_v59 }
 0x19b   :  { %168 = vmin.xlane.f32.xlu2 %v167_v49 }
 0x19c   :  { %v143_v50 = vpop.xlane.xlu1 %142 }
 0x19d   :  { %vm146_vm8 = vcmp.eq.f32.partialorder %v140_v45, %v143_v50  ;;  %v237_v54 = vsub.f32 1.0, %v143_v50 }
 0x19e   :  { %v148_v51 = vsel %vm146_vm8, %v539_v41, 128 }
 0x19f   :  { %v151_v52 = vshra.s32 %v148_v51, 16  ;;  %v241_v56 = vsel %vm225_vm9, %v237_v54, 0.0  ;;  %v150_v63 = vand.u32 65535, %v148_v51 }
 0x1a0   :  { %v243_v58 = vadd.f32 %v242_v57, %v241_v56 }
 0x1a1   :  { %v153_v53 = vcvt.s32.f32 %v151_v52  ;;  %v152_v1 = vcvt.s32.f32 %v150_v63 }
 0x1a3   :  { %154 = vmin.xlane.f32.xlu2 %v153_v53 }
 0x1ab   :  { %244 = vadd.xlane.f32.xlu2 %v243_v58 }
 0x20e   :  { %v546_v60 = vpop.xlane.xlu2 %168 }
 0x20f   :  { %vm170_vm10 = vcmp.eq.f32.partialorder %v167_v49, %v546_v60  ;;  %v175_v27 = vcvt.f32.s32 %v546_v60 }
 0x210   :  { %v171_v62 = vsel %vm170_vm10, %v166_v61, inf }
 0x211   :  { %172 = vmin.xlane.f32.xlu0 %v171_v62  ;;  %v176_v29 = vshll.u32 %v175_v27, 16 }
 0x216   :  { %v549_v0 = vpop.xlane.xlu2 %154 }
 0x217   :  { %vm156_vm11 = vcmp.eq.f32.partialorder %v153_v53, %v549_v0  ;;  %v161_v32 = vcvt.f32.s32 %v549_v0 }
 0x218   :  { %v157_v2 = vsel %vm156_vm11, %v152_v1, inf }
 0x219   :  { %158 = vmin.xlane.f32.xlu1 %v157_v2  ;;  %v162_v35 = vshll.u32 %v161_v32, 16 }
 0x21e   :  { %v245_v3 = vpop.xlane.xlu2 %244 }
 0x21f   :  { %v246_v4 = vrot.slane %v245_v3, 4 }
 0x221   :  { %v247_v5 = vadd.f32 %v246_v4, %v245_v3 }
 0x223   :  { %v248_v6 = vrot.slane %v247_v5, 2 }
 0x225   :  { %v249_v7 = vadd.f32 %v248_v6, %v247_v5 }
 0x227   :  { %v250_v8 = vrot.slane %v249_v7, 1 }
 0x229   :  { %v251_v9 = vadd.f32 %v250_v8, %v249_v7 }
 0x22b   :  { %331 = vpush %v251_v9 }
 0x25c   :  { %s332_s2 = spop %331 }
 0x25d   :  { %v253_v23 = vstv %s332_s2 }
 0x25e   :  { %254 = vst [vmem:[#allocation9] sm:$0xff] %v253_v23 }
 0x25f   :  { %280 = dma.vmem_to_hbm [thread:$0]  %s276_s13, 128, %s278_s16, [#allocation10]  }
 0x284   :  { %v173_v28 = vpop.xlane.xlu0 %172 }
 0x285   :  { %v174_v30 = vcvt.f32.s32 %v173_v28 }
 0x287   :  { %v177_v31 = vadd.s32 %v176_v29, %v174_v30 }
 0x289   :  { %227 = vst.msk [vmem:[%s577_s4 + $0x8] sm:$0xff] %vm225_vm9, %v177_v31  ;;  %vm179_vm12 = vcmp.eq.s32.totalorder %v539_v41, %v177_v31 }
 0x28a   :  { %298 = vmatmul.msk.f32.vlgmr.msra.gmra.mxu3 %vm179_vm12, %v478_v33 }
 0x28c   :  { %v159_v34 = vpop.xlane.xlu1 %158 }
 0x28d   :  { %v160_v36 = vcvt.f32.s32 %v159_v34 }
 0x28f   :  { %v163_v37 = vadd.s32 %v162_v35, %v160_v36 }
 0x291   :  { %226 = vst.msk [vmem:[%s577_s4] sm:$0xff] %vm225_vm9, %v163_v37  ;;  %vm178_vm13 = vcmp.eq.s32.totalorder %v539_v41, %v163_v37 }
 0x292   :  { %297 = vmatmul.msk.f32.vlgmr.msra.gmra.mxu1 %vm178_vm13, %v478_v33 }
 0x30d   :  { %v220_v38 = vpop.f32.mrf.mxu3 }
 0x30e   :  { %224 = vst [vmem:[#allocation8 + $0x8] sm:$0xff] %v220_v38 }
 0x30f   :  { %v217_v39 = vpop.f32.mrf.mxu1 }
 0x310   :  { %223 = vst [vmem:[#allocation8] sm:$0xff] %v217_v39 }
 0x311   :  { %267 = dma.vmem_to_hbm [thread:$0]  %s260_s18, 256, %s262_s21, [#allocation4], %s474_s26, %s474_s26, %s475_s27  }
 0x312   :  { %469 = dma.done.wait [#allocation4], 256  }
 0x313   :  { %470 = vsyncadd [#allocation4], 4294967040 }
 0x314   :  { %471 = dma.done.wait [#allocation10], 128  }
 0x315   :  { %472 = vsyncadd [#allocation10], 4294967168 }
 0x316   :  { %291 = vsyncpa [#allocation3], 1 }
 0x317   :  { %292 = vsyncpa [#allocation6], 1 }
 0x318   :  { %293 = vsyncpa [#allocation4], 1 }
 0x319   :  { %294 = vsyncpa [#allocation10], 1 }

</bundles_post_ra>
